<compile_context>
chip_gen: v7x
topology: tpu7x:2x2x1
jax: 0.10.0
libtpu: 0.0.40
codegen_flags: <defaults>
</compile_context>

<pallas_src>
import math

import jax
import jax.numpy as jnp
from jax import lax
from jax.experimental import pallas as pl
from jax.experimental.pallas import tpu as pltpu


def _round_up(n: int, m: int) -> int:
    return ((n + m - 1) // m) * m


def _cdiv(a: int, b: int) -> int:
    return -(-a // b)


def _onehot_gather_kernel(idx_ref, pe_ref, out_ref, acc_ref):
    """One (batch-tile, T-tile) step of the one-hot MXU gather.

    idx_ref: (TB, 1) int32   -- global timestep indices for this batch tile.
    pe_ref:  (T_BLK, Dp)     -- current streamed tile of the (padded) table.
    out_ref: (TB, Dp)        -- output block for this batch tile.
    acc_ref: (TB, Dp) f32    -- accumulator, resident across the T axis.
    """
    t = pl.program_id(1)

    @pl.when(t == 0)
    def _init():
        acc_ref[...] = jnp.zeros_like(acc_ref)

    tb = acc_ref.shape[0]
    t_blk = pe_ref.shape[0]

    idx = idx_ref[...]                                               # (TB, 1)
    col = lax.broadcasted_iota(jnp.int32, (tb, t_blk), 1) + t * t_blk
    one_hot = (col == idx).astype(pe_ref.dtype)                      # (TB, T_BLK)
    acc_ref[...] += jnp.dot(one_hot, pe_ref[...],
                            preferred_element_type=jnp.float32)

    @pl.when(t == pl.num_programs(1) - 1)
    def _finalize():
        out_ref[...] = acc_ref[...].astype(out_ref.dtype)


def make_sinusoidal_table(T: int, output_dim: int) -> jnp.ndarray:
    """Deterministic construction matching the PyTorch __init__ buffer."""
    assert output_dim % 2 == 0, "output_dim must be even (same as PyTorch module)"
    position = jnp.arange(T, dtype=jnp.float32)[:, None]                      # (T, 1)
    div_term = jnp.exp(
        jnp.arange(0, output_dim, 2, dtype=jnp.float32)
        * (-math.log(10000.0) / output_dim)
    )                                                                          # (D/2,)
    pe = jnp.zeros((T, output_dim), dtype=jnp.float32)
    pe = pe.at[:, 0::2].set(jnp.sin(position * div_term))
    pe = pe.at[:, 1::2].set(jnp.cos(position * div_term))
    return pe


def positional_embedding_forward(pe: jnp.ndarray, x: jnp.ndarray,
                                 *, batch_tile: int = 256) -> jnp.ndarray:
    """Equivalent of `pe[x].reshape(x.shape[0], output_dim)`.

    x: integer index tensor of shape (B,) or (B, 1) (timesteps).
    Returns: (B, output_dim) with pe's dtype.
    """
    B = x.shape[0]
    T, D = pe.shape
    dtype = pe.dtype
    item = jnp.dtype(dtype).itemsize

    # NOTE: clamp guards out-of-range indices (PyTorch would raise); without it an
    # out-of-range timestep would silently yield a zero row from the one-hot.
    idx = jnp.clip(x.reshape(B).astype(jnp.int32), 0, T - 1)

    # --- batch tiling: tile-count-aware TB (padding < 8 rows/tile); split >=2
    # tiles when B >= 16 so v7x can shard the "parallel" axis over both TCs.
    nb = _cdiv(B, batch_tile)
    if nb == 1 and B >= 16:
        nb = 2
    TB = _round_up(_cdiv(B, nb), 8)
    Bp = nb * TB

    # --- column / T padding: lane-dense output, T tiled for streaming.
    Dp = _round_up(D, 128)
    Tp = _round_up(T, 128)
    T_BLK = 512 if Tp % 512 == 0 else (256 if Tp % 256 == 0 else 128)
    nT = Tp // T_BLK

    idx_p = jnp.pad(idx, (0, Bp - B)).reshape(Bp, 1)     # padded rows gather row 0
    pe_p = pe if (Tp, Dp) == (T, D) else jnp.pad(pe, ((0, Tp - T), (0, Dp - D)))

    # --- VMEM budget with generation-aware cap.
    need = (2 * T_BLK * Dp * item        # double-buffered streamed table tiles
            + 2 * TB * Dp * item         # double-buffered output blocks
            + 2 * TB * 128 * 4           # (TB,1) int32 idx blocks (lane-padded)
            + TB * Dp * 4                # f32 accumulator scratch
            + TB * T_BLK * 4             # one-hot temporary
            + (2 << 20))                 # slack for Mosaic internals
    try:
        cap = int(pltpu.get_tpu_info().vmem_capacity_bytes) - (8 << 20)
    except Exception:
        cap = 64 << 20                   # conservative (valid on v5e/v6e/v7x)
    vmem_limit = int(min(max(need, 16 << 20), max(cap, 16 << 20)))

    cost = pl.CostEstimate(
        flops=2 * Bp * Tp * Dp,
        transcendentals=0,
        bytes_accessed=int(nb * Tp * Dp * item + Bp * Dp * item + Bp * 4),
    )

    grid_spec = pltpu.PrefetchScalarGridSpec(
        num_scalar_prefetch=0,
        grid=(nb, nT),
        in_specs=[
            pl.BlockSpec((TB, 1), lambda b, t: (b, 0)),       # index vector per tile
            pl.BlockSpec((T_BLK, Dp), lambda b, t: (t, 0)),   # streamed table tile
        ],
        out_specs=pl.BlockSpec((TB, Dp), lambda b, t: (b, 0)),
        scratch_shapes=[pltpu.VMEM((TB, Dp), jnp.float32)],
    )

    out = pl.pallas_call(
        _onehot_gather_kernel,
        out_shape=jax.ShapeDtypeStruct((Bp, Dp), dtype),
        grid_spec=grid_spec,
        compiler_params=pltpu.CompilerParams(
            dimension_semantics=("parallel", "arbitrary"),
            vmem_limit_bytes=vmem_limit,
        ),
        cost_estimate=cost,
    )(idx_p, pe_p)

    # TODO(synk): for very small B with very large tables, add an HBM-resident
    # (memory_space=pl.ANY) manual-DMA row-gather path that moves only ~B*D bytes
    # instead of streaming the whole table.
    return out[:B, :D]


if __name__ == "__main__":
    # Small shapes consistent with the module: T timesteps, output_dim features,
    # a batch of B integer timestep indices.
    T = 16
    output_dim = 32
    B = 8

    pe = make_sinusoidal_table(T, output_dim)

    key = jax.random.PRNGKey(0)
    x = jax.random.randint(key, (B,), minval=0, maxval=T, dtype=jnp.int32)

    out = jax.block_until_ready(positional_embedding_forward(pe, x))
    ref = jnp.take(pe, x, axis=0).reshape(B, output_dim)
    assert out.shape == (B, output_dim), out.shape
    assert out.dtype == pe.dtype, out.dtype
    # The MXU's default f32 matmul precision may round operands to bf16
    # (abs error <~ 2e-3 on values in [-1, 1]); the gather is otherwise exact.
    assert jnp.allclose(out, ref, atol=5e-3, rtol=0.0), \
        float(jnp.max(jnp.abs(out - ref)))

    # Also exercise B-not-multiple-of-8 padding and (B, 1)-shaped indices.
    B2 = 5
    x2 = jax.random.randint(jax.random.PRNGKey(1), (B2, 1), 0, T, dtype=jnp.int32)
    out2 = jax.block_until_ready(positional_embedding_forward(pe, x2))
    ref2 = jnp.take(pe, x2.reshape(B2), axis=0).reshape(B2, output_dim)
    assert out2.shape == (B2, output_dim), out2.shape
    assert jnp.allclose(out2, ref2, atol=5e-3, rtol=0.0)

    print("KERNEL_OK")
</pallas_src>

<mosaic_0001>
module attributes {stable_mosaic.version = 11 : i64} {
  func.func @_onehot_gather_kernel(%arg0: i32, %arg1: i32, %arg2: memref<8x1xi32, #tpu.memory_space<vmem>>, %arg3: memref<128x128xf32, #tpu.memory_space<vmem>>, %arg4: memref<8x128xf32, #tpu.memory_space<vmem>>, %arg5: memref<8x128xf32, #tpu.memory_space<vmem>>) attributes {dimension_semantics = [#tpu.dimension_semantics<parallel>, #tpu.dimension_semantics<arbitrary>], iteration_bounds = array<i64: 1, 1>, scalar_prefetch = 0 : i64, scratch_operands = 1 : i64, tpu.core_type = #tpu.core_type<tc>, window_params = [{transform_indices = @transform_0, window_bounds = array<i64: 8, 1>}, {transform_indices = @transform_1, window_bounds = array<i64: 128, 128>}, {transform_indices = @transform_2, window_bounds = array<i64: 8, 128>}]} {
    %c0_i32 = arith.constant 0 : i32
    %0 = arith.cmpi eq, %arg1, %c0_i32 : i32
    %1 = arith.extui %0 : i1 to i32
    %c0_i32_0 = arith.constant 0 : i32
    %2 = arith.cmpi ne, %1, %c0_i32_0 : i32
    scf.if %2 {
      %cst_10 = arith.constant 0.000000e+00 : f32
      %20 = vector.broadcast %cst_10 : f32 to vector<8x128xf32>
      %c0_11 = arith.constant 0 : index
      %c0_12 = arith.constant 0 : index
      %21 = vector.load %arg5[%c0_11, %c0_12] : memref<8x128xf32, #tpu.memory_space<vmem>>, vector<8x128xf32>
      tpu.vector_store %arg5[%c0_11, %c0_12], %20 {strides = array<i32>} : memref<8x128xf32, #tpu.memory_space<vmem>>, vector<8x128xf32>,
    } else {
    }
    %c0 = arith.constant 0 : index
    %c0_1 = arith.constant 0 : index
    %3 = vector.load %arg2[%c0, %c0_1] : memref<8x1xi32, #tpu.memory_space<vmem>>, vector<8x1xi32>
    %4 = tpu.iota {dimensions = array<i32: 1>} : vector<8x128xi32>
    %c128_i32 = arith.constant 128 : i32
    %5 = arith.muli %arg1, %c128_i32 : i32
    %6 = vector.broadcast %5 : i32 to vector<8x128xi32>
    %7 = arith.addi %4, %6 : vector<8x128xi32>
    %8 = vector.broadcast %3 : vector<8x1xi32> to vector<8x128xi32>
    %9 = arith.cmpi eq, %7, %8 : vector<8x128xi32>
    %10 = arith.extui %9 : vector<8x128xi1> to vector<8x128xi32>
    %11 = arith.sitofp %10 : vector<8x128xi32> to vector<8x128xf32>
    %c0_2 = arith.constant 0 : index
    %c0_3 = arith.constant 0 : index
    %12 = vector.load %arg5[%c0_2, %c0_3] : memref<8x128xf32, #tpu.memory_space<vmem>>, vector<8x128xf32>
    %c0_4 = arith.constant 0 : index
    %c0_5 = arith.constant 0 : index
    %13 = vector.load %arg3[%c0_4, %c0_5] : memref<128x128xf32, #tpu.memory_space<vmem>>, vector<128x128xf32>
    %cst = arith.constant dense<0.000000e+00> : vector<8x128xf32>
    %14 = tpu.matmul %11, %13, %cst {dimension_numbers = #tpu.dot_dimension_numbers<[1], [0], [0], [1], [0, 0, 1, 1], [], []>} : vector<8x128xf32>, vector<128x128xf32>, vector<8x128xf32> -> vector<8x128xf32>
    %15 = arith.addf %12, %14 : vector<8x128xf32>
    %c0_6 = arith.constant 0 : index
    %c0_7 = arith.constant 0 : index
    %16 = vector.load %arg5[%c0_6, %c0_7] : memref<8x128xf32, #tpu.memory_space<vmem>>, vector<8x128xf32>
    tpu.vector_store %arg5[%c0_6, %c0_7], %15 {strides = array<i32>} : memref<8x128xf32, #tpu.memory_space<vmem>>, vector<8x128xf32>,
    %c0_i32_8 = arith.constant 0 : i32
    %17 = arith.cmpi eq, %arg1, %c0_i32_8 : i32
    %18 = arith.extui %17 : i1 to i32
    %c0_i32_9 = arith.constant 0 : i32
    %19 = arith.cmpi ne, %18, %c0_i32_9 : i32
    scf.if %19 {
      %c0_10 = arith.constant 0 : index
      %c0_11 = arith.constant 0 : index
      %20 = vector.load %arg5[%c0_10, %c0_11] : memref<8x128xf32, #tpu.memory_space<vmem>>, vector<8x128xf32>
      %c0_12 = arith.constant 0 : index
      %c0_13 = arith.constant 0 : index
      %21 = vector.load %arg4[%c0_12, %c0_13] : memref<8x128xf32, #tpu.memory_space<vmem>>, vector<8x128xf32>
      tpu.vector_store %arg4[%c0_12, %c0_13], %20 {strides = array<i32>} : memref<8x128xf32, #tpu.memory_space<vmem>>, vector<8x128xf32>,
    } else {
    }
    return
  }
  func.func @transform_0(%arg0: i32, %arg1: i32) -> (i32, i32) {
    %c0_i32 = arith.constant 0 : i32
    %c0_i32_0 = arith.constant 0 : i32
    return %arg0, %c0_i32 : i32, i32
  }
  func.func @transform_1(%arg0: i32, %arg1: i32) -> (i32, i32) {
    %c0_i32 = arith.constant 0 : i32
    %c0_i32_0 = arith.constant 0 : i32
    return %arg1, %c0_i32 : i32, i32
  }
  func.func @transform_2(%arg0: i32, %arg1: i32) -> (i32, i32) {
    %c0_i32 = arith.constant 0 : i32
    %c0_i32_0 = arith.constant 0 : i32
    return %arg0, %c0_i32 : i32, i32
  }
}

</mosaic_0001>

<bundles_post_ra>
// kernel: tpu_custom_call.1
= control target key start
LH: loop header
LB: loop body
LE: loop exit
PB: predicated region body
PF: predicated region fallthrough
CT: control target
= control target key end

     0   :  { %7 = vsyncpa [#allocation4], 0  ;;  %s339_s0 = inlined_call_operand.vmem [shape: s32[8,1], index: 0, kind: input, shape index: {}]   ;;  %s340_s1 = inlined_call_operand.hbm [shape: f32[128,128], index: 1, kind: input, shape index: {}]   ;;  %s341_s2 = inlined_call_operand.hbm [shape: f32[8,128], index: 2, kind: output, shape index: {}]  }
   0x1   :  { %8 = vsyncpa [#allocation5], 0  ;;  %s288_s9 = smov [#allocation3]   ;;  %s240_s13 = scalar_lea.hbm %s340_s1, 2048 }
   0x2   :  { %s16_s10 = sshll.u32 %s288_s9, 4  ;;  %p241_p0 = scmp.ne.s32.totalorder %s340_s1, %s240_s13  ;;  %s17_s10 = int_to_ptr.vmem [resolvable:$true] %s16_s10 }
   0x3   :  { %p244_p1 = scmp.lt.u32.totalorder %s240_s13, %s340_s1 }
   0x5   :  { %p246_p2 = pnand %p244_p1, %p241_p0 }
   0x7   :  { %249 = shalt.err (!%p246_p2)
}
   0x8   :  { %s250_s18 = scalar_lea.vmem %s17_s10, 2048  ;;  %p255_p4 = scmp.lt.s32.totalorder %s17_s10, %s17_s10 }
   0x9   :  { %p251_p3 = scmp.ne.s32.totalorder %s17_s10, %s250_s18  ;;  %p256_p5 = scmp.lt.s32.totalorder %s250_s18, %s250_s18 }
   0xb   :  { %p257_p6 = por %p256_p5, %p255_p4 }
   0xd   :  { %p258_p7 = pnand %p257_p6, %p251_p3 }
   0xf   :  { %261 = shalt.err (!%p258_p7)
}
  0x10   :  { %s289_s19 = smov 128   ;;  %s290_s20 = smov 8  }
  0x11   :  { %22 = dma.hbm_to_vmem [thread:$0]  %s340_s1, 2048, %s17_s10, [#allocation4], %s289_s19, %s289_s19, %s290_s20  }
  0x12   :  { %284 = dma.done.wait [#allocation4], 2048  }
  0x13   :  { %285 = vsyncadd [#allocation4], 4294965248  ;;  %v291_v0 = vmov 0   ;;  %v292_v1 = vmov 0.0|0.0   ;;  %v31_v2 = vld [vmem:[%s339_s0] sm:$0xff]  ;;  %v45_v4 = vld [vmem:[#allocation3 + $0x8] sm:$0xff]  ;;  %v32_v28 = vlaneseq }
  0x14   :  { %239 = vset.pattern.permute.xlu0 %v291_v0  ;;  %206 = vmatprep.subr.bf16.mxu0 %v292_v1  ;;  %v44_v3 = vld [vmem:[#allocation3] sm:$0xff]  ;;  %v46_v6 = vld [vmem:[#allocation3 + $0x10] sm:$0xff]  ;;  %v47_v7 = vld [vmem:[#allocation3 + $0x18] sm:$0xff]  ;;  %vm293_vm0 = vmmov 0   ;;  %v294_v8 = vmov 0.0   ;;  %v295_v31 = vmov 1.0  }
  0x15   :  { %38 = vperm.xlu0 %239, %v31_v2   ;;  %v207_v5 = vpack.c.bf16 %v45_v4, %v44_v3  ;;  %203 = vmatprep.mubr.msk.f32.mxu0 %vm293_vm0, %v294_v8  ;;  %v210_v9 = vpack.c.bf16 %v47_v7, %v46_v6  ;;  %v48_v10 = vld [vmem:[#allocation3 + $0x20] sm:$0xff]  ;;  %v49_v11 = vld [vmem:[#allocation3 + $0x28] sm:$0xff]  ;;  %v50_v13 = vld [vmem:[#allocation3 + $0x30] sm:$0xff]  ;;  %v33_v29 = vand.u32 127, %v32_v28  ;;  %s296_s0 = smov [#allocation6]  }
  0x16   :  { %v213_v12 = vpack.c.bf16 %v49_v11, %v48_v10  ;;  %v51_v14 = vld [vmem:[#allocation3 + $0x38] sm:$0xff]  ;;  %v52_v16 = vld [vmem:[#allocation3 + $0x40] sm:$0xff]  ;;  %v53_v17 = vld [vmem:[#allocation3 + $0x48] sm:$0xff]  ;;  %s143_s1 = sshll.u32 %s296_s0, 4  ;;  %s144_s1 = int_to_ptr.vmem [resolvable:$true] %s143_s1 }
  0x17   :  { %208 = vmatpush3.bf16.msra.mxu0 %v207_v5  ;;  %v216_v15 = vpack.c.bf16 %v51_v14, %v50_v13  ;;  %v219_v18 = vpack.c.bf16 %v53_v17, %v52_v16  ;;  %v54_v19 = vld [vmem:[#allocation3 + $0x50] sm:$0xff]  ;;  %v55_v20 = vld [vmem:[#allocation3 + $0x58] sm:$0xff]  ;;  %v56_v22 = vld [vmem:[#allocation3 + $0x60] sm:$0xff]  ;;  %s262_s25 = scalar_lea.vmem %s144_s1, 128  ;;  %p267_p9 = scmp.lt.s32.totalorder %s144_s1, %s144_s1 }
  0x18   :  { %209 = vmatprep.subr.bf16.mxu0 %v292_v1  ;;  %v222_v21 = vpack.c.bf16 %v55_v20, %v54_v19  ;;  %v57_v23 = vld [vmem:[#allocation3 + $0x68] sm:$0xff]  ;;  %v58_v25 = vld [vmem:[#allocation3 + $0x70] sm:$0xff]  ;;  %v59_v26 = vld [vmem:[#allocation3 + $0x78] sm:$0xff]  ;;  %p263_p8 = scmp.ne.s32.totalorder %s144_s1, %s262_s25  ;;  %p268_p10 = scmp.lt.s32.totalorder %s262_s25, %s262_s25 }
  0x19   :  { %v225_v24 = vpack.c.bf16 %v57_v23, %v56_v22  ;;  %v228_v27 = vpack.c.bf16 %v59_v26, %v58_v25 }
  0x1a   :  { %p269_p11 = por %p268_p10, %p267_p9 }
  0x1b   :  { %211 = vmatpush3.bf16.msra.mxu0 %v210_v9 }
  0x1c   :  { %212 = vmatprep.subr.bf16.mxu0 %v292_v1  ;;  %p270_p12 = pnand %p269_p11, %p263_p8 }
  0x1f   :  { %214 = vmatpush3.bf16.msra.mxu0 %v213_v12 }
  0x20   :  { %215 = vmatprep.subr.bf16.mxu0 %v292_v1 }
  0x23   :  { %217 = vmatpush3.bf16.msra.mxu0 %v216_v15 }
  0x24   :  { %218 = vmatprep.subr.bf16.mxu0 %v292_v1 }
  0x27   :  { %220 = vmatpush3.bf16.msra.mxu0 %v219_v18 }
  0x28   :  { %221 = vmatprep.subr.bf16.mxu0 %v292_v1 }
  0x2b   :  { %223 = vmatpush3.bf16.msra.mxu0 %v222_v21 }
  0x2c   :  { %224 = vmatprep.subr.bf16.mxu0 %v292_v1 }
  0x2f   :  { %226 = vmatpush3.bf16.msra.mxu0 %v225_v24 }
  0x30   :  { %227 = vmatprep.subr.bf16.mxu0 %v292_v1 }
  0x33   :  { %229 = vmatpush3.bf16.msra.mxu0 %v228_v27 }
  0x94   :  { %v39_v30 = vpop.permute.xlu0 %38 }
  0x95   :  { %vm40_vm1 = vcmp.eq.s32.totalorder %v33_v29, %v39_v30 }
  0x96   :  { %204 = vmatmul.mubr.msk.f32.vlgmr.msra.gmra.mrb[0].mxu0 %vm40_vm1, %v295_v31 }
 0x169   :  { %v126_v32 = vpop.f32.mrb[0].mxu0 }
 0x16a   :  { %136 = vst [vmem:[#allocation6] sm:$0xff] %v126_v32  ;;  %v205_v33 = vpop.f32.mrb[1].mxu0 }
 0x16b   :  { %273 = shalt.err (!%p270_p12)
}
 0x16c   :  { %s274_s28 = scalar_lea.hbm %s341_s2, 128 }
 0x16d   :  { %p275_p13 = scmp.ne.s32.totalorder %s341_s2, %s274_s28  ;;  %p278_p0 = scmp.lt.u32.totalorder %s274_s28, %s341_s2 }
 0x16f   :  { %p280_p1 = pnand %p278_p0, %p275_p13 }
 0x171   :  { %283 = shalt.err (!%p280_p1)
}
 0x172   :  { %146 = dma.vmem_to_hbm [thread:$0]  %s144_s1, 128, %s341_s2, [#allocation5]  }
 0x173   :  { %286 = dma.done.wait [#allocation5], 128  }
 0x174   :  { %287 = vsyncadd [#allocation5], 4294967168 }
 0x175   :  { %150 = vsyncpa [#allocation4], 1 }
 0x176   :  { %151 = vsyncpa [#allocation5], 1 }

</bundles_post_ra>
